<compile_context>
chip_gen: v7x
topology: tpu7x:2x2x1
jax: 0.10.0
libtpu: 0.0.40
codegen_flags: <defaults>
</compile_context>

<pallas_src>
import functools

import jax
import jax.numpy as jnp
from jax.experimental import pallas as pl
from jax.experimental.pallas import tpu as pltpu

_LANES = 128      # vreg lane width
_SUBLANES = 8     # f32 sublane count


def _round_up(x, m):
    return (x + m - 1) // m * m


def _vae_decoder_kernel(z_ref, eps_ref, w_head_ref, w0_ref, w12_ref, b_ref,
                        out_ref):
    """One batch tile of the full VAE-decoder forward.

    z_ref     : [TB, d_in]          f32  (un-padded encoder output)
    eps_ref   : [TB, Dl]            f32  (N(0,1) noise, zero-padded cols)
    w_head_ref: [d_in, 2*Dl]        f32  = [w_mu | w_logvar]
    w0_ref    : [Dl, Dh]            bf16
    w12_ref   : [Dh, Dh + Do]       bf16 = [w1 | w2]
    b_ref     : [1, 2*Dl+2*Dh+Do]   f32  = [b_mu | b_lv | b0 | b1 | b2]
    out_ref   : [TB, Do + 2*Dl]     f32  = [y | mu | logvar]
    Dl/Dh/Do are 128-multiples, so every column slice below is lane-aligned and
    every store is an unmasked vst.
    """
    Dl = eps_ref.shape[1]
    Dh = w0_ref.shape[1]
    Do = w12_ref.shape[1] - Dh

    # Fused mu/logvar head (one MXU pass).  Kept in f32 for mu/logvar accuracy.
    head = (jnp.dot(z_ref[...], w_head_ref[...],
                    preferred_element_type=jnp.float32) + b_ref[:, 0:2 * Dl])
    mu = head[:, 0:Dl]
    logvar = head[:, Dl:2 * Dl]

    # Reparameterization on the VPU/EUP (f32).  Padded cols: logvar=0 -> std=1,
    # eps=0 -> latent padded cols stay 0 (and w0's padded rows are 0 anyway).
    std = jnp.exp(0.5 * logvar)
    latent = mu + std * eps_ref[...]

    b0 = b_ref[:, 2 * Dl:2 * Dl + Dh]
    b1 = b_ref[:, 2 * Dl + Dh:2 * Dl + 2 * Dh]
    b2 = b_ref[:, 2 * Dl + 2 * Dh:2 * Dl + 2 * Dh + Do]

    # _SimpleMLP (n_layers=3, relu hidden, no output activation).
    # bf16 MXU operands, f32 accumulation.
    h = jnp.dot(latent.astype(jnp.bfloat16), w0_ref[...],
                preferred_element_type=jnp.float32) + b0
    h = jnp.maximum(h, 0.0)
    h = jnp.dot(h.astype(jnp.bfloat16), w12_ref[:, 0:Dh],
                preferred_element_type=jnp.float32) + b1
    h = jnp.maximum(h, 0.0)
    y = jnp.dot(h.astype(jnp.bfloat16), w12_ref[:, Dh:Dh + Do],
                preferred_element_type=jnp.float32) + b2

    # Single lane-dense output slab: [y | mu | logvar].
    out_ref[:, 0:Do] = y
    out_ref[:, Do:Do + Dl] = mu
    out_ref[:, Do + Dl:Do + 2 * Dl] = logvar


def prepare_params(params):
    """Pack + pad parameters ONCE (hoisted off the per-call path).

    Per-dimension padding: only output/lane dims go to multiples of 128; the head
    matmul keeps its true contraction dim d_in.  MLP weights are stored in bf16
    (MXU-native everywhere, half the HBM->VMEM bytes); head weights + all biases
    stay f32.
    """
    d_in = params["w_mu"].shape[0]
    d_latent = params["w_mu"].shape[1]
    d_hidden = params["w0"].shape[1]
    d_out = params["w2"].shape[1]
    Dl = _round_up(d_latent, _LANES)
    Dh = _round_up(d_hidden, _LANES)
    Do = _round_up(d_out, _LANES)

    def padw(w, rows, cols, dtype):
        return jnp.pad(w, ((0, rows - w.shape[0]),
                           (0, cols - w.shape[1]))).astype(dtype)

    def padb(b, cols):
        b = b.reshape(1, -1)
        return jnp.pad(b, ((0, 0), (0, cols - b.shape[1]))).astype(jnp.float32)

    w_head = jnp.concatenate(
        [padw(params["w_mu"], d_in, Dl, jnp.float32),
         padw(params["w_lv"], d_in, Dl, jnp.float32)], axis=1)
    w0 = padw(params["w0"], Dl, Dh, jnp.bfloat16)
    w12 = jnp.concatenate(
        [padw(params["w1"], Dh, Dh, jnp.bfloat16),
         padw(params["w2"], Dh, Do, jnp.bfloat16)], axis=1)
    b_all = jnp.concatenate(
        [padb(params["b_mu"], Dl), padb(params["b_lv"], Dl),
         padb(params["b0"], Dh), padb(params["b1"], Dh),
         padb(params["b2"], Do)], axis=1)

    dims = dict(d_in=d_in, d_latent=d_latent, d_hidden=d_hidden, d_out=d_out,
                Dl=Dl, Dh=Dh, Do=Do)
    return dict(w_head=w_head, w0=w0, w12=w12, b_all=b_all, dims=dims)


def simple_vae_decoder(z, eps, packed):
    """Whole VAE-decoder forward in one Pallas call (batch-tiled grid)."""
    dims = packed["dims"]
    d_in, d_latent, d_out = dims["d_in"], dims["d_latent"], dims["d_out"]
    Dl, Dh, Do = dims["Dl"], dims["Dh"], dims["Do"]

    B = z.shape[0]
    # One tile for small B; 512-row tiles (parallel grid axis -> both TCs on v7x,
    # double-buffered activation DMA) for large B.
    TB = 512 if B > 512 else _round_up(B, _SUBLANES)
    Bp = _round_up(B, TB)

    z = z.astype(jnp.float32)
    eps = eps.astype(jnp.float32)
    if Bp != B:
        z = jnp.pad(z, ((0, Bp - B), (0, 0)))
        eps = jnp.pad(eps, ((0, Bp - B), (0, 0)))
    if eps.shape[1] != Dl:
        eps = jnp.pad(eps, ((0, 0), (0, Dl - eps.shape[1])))

    W_out = Do + 2 * Dl
    grid = (Bp // TB,)

    flops = 2 * Bp * (d_in * 2 * Dl + Dl * Dh + Dh * Dh + Dh * Do)
    bytes_accessed = (z.size * 4 + eps.size * 4
                      + packed["w_head"].size * 4
                      + packed["w0"].size * 2 + packed["w12"].size * 2
                      + packed["b_all"].size * 4
                      + Bp * W_out * 4)
    cost = pl.CostEstimate(flops=flops, transcendentals=Bp * Dl,
                           bytes_accessed=bytes_accessed)

    # TODO(synk): for very large D on v7x (64 MiB VMEM) set an explicit
    # vmem_limit_bytes and/or tile the hidden dim; unnecessary at these shapes.
    out = pl.pallas_call(
        _vae_decoder_kernel,
        out_shape=jax.ShapeDtypeStruct((Bp, W_out), jnp.float32),
        grid=grid,
        in_specs=[
            pl.BlockSpec((TB, d_in), lambda i: (i, 0)),            # z
            pl.BlockSpec((TB, Dl), lambda i: (i, 0)),              # eps
            pl.BlockSpec((d_in, 2 * Dl), lambda i: (0, 0)),        # w_head (resident)
            pl.BlockSpec((Dl, Dh), lambda i: (0, 0)),              # w0     (resident)
            pl.BlockSpec((Dh, Dh + Do), lambda i: (0, 0)),         # w12    (resident)
            pl.BlockSpec((1, 2 * Dl + 2 * Dh + Do), lambda i: (0, 0)),  # biases
        ],
        out_specs=pl.BlockSpec((TB, W_out), lambda i: (i, 0)),
        compiler_params=pltpu.CompilerParams(
            dimension_semantics=("parallel",)),
        cost_estimate=cost,
    )(z, eps, packed["w_head"], packed["w0"], packed["w12"], packed["b_all"])

    y = out[:B, 0:d_out]
    mu = out[:B, Do:Do + d_latent]
    logvar = out[:B, Do + Dl:Do + Dl + d_latent]
    return y, mu, logvar


def init_params(key, d_in, d_latent, d_hidden, d_out):
    """Deterministic synthetic parameters (PyTorch-Linear shapes, pre-transposed)."""
    ks = jax.random.split(key, 10)

    def lin(kw, kb, din, dout, scale):
        w = jax.random.uniform(kw, (din, dout), jnp.float32, -scale, scale)
        b = jax.random.uniform(kb, (1, dout), jnp.float32, -scale, scale)
        return w, b

    w_mu, b_mu = lin(ks[0], ks[1], d_in, d_latent, (1.0 / d_in) ** 0.5)
    w_lv, b_lv = lin(ks[2], ks[3], d_in, d_latent, (1.0 / d_in) ** 0.5)
    w0, b0 = lin(ks[4], ks[5], d_latent, d_hidden, (1.0 / d_latent) ** 0.5)
    w1, b1 = lin(ks[6], ks[7], d_hidden, d_hidden, (1.0 / d_hidden) ** 0.5)
    w2, b2 = lin(ks[8], ks[9], d_hidden, d_out, (1.0 / d_hidden) ** 0.5)
    return dict(w_mu=w_mu, b_mu=b_mu, w_lv=w_lv, b_lv=b_lv,
                w0=w0, b0=b0, w1=w1, b1=b1, w2=w2, b2=b2)


def reference_forward(z, eps, p):
    mu = z @ p["w_mu"] + p["b_mu"]
    logvar = z @ p["w_lv"] + p["b_lv"]
    lat = mu + jnp.exp(0.5 * logvar) * eps
    h = jnp.maximum(lat @ p["w0"] + p["b0"], 0.0)
    h = jnp.maximum(h @ p["w1"] + p["b1"], 0.0)
    y = h @ p["w2"] + p["b2"]
    return y, mu, logvar


if __name__ == "__main__":
    # Small shapes consistent with the module: batch=8, d_in=32,
    # d_latent/d_hidden/d_out default to d_in, n_layers=3.
    B, D_IN = 8, 32
    D_LATENT = D_HIDDEN = D_OUT = D_IN

    key = jax.random.PRNGKey(0)
    k_z, k_eps, k_p = jax.random.split(key, 3)

    z = jax.random.normal(k_z, (B, D_IN), jnp.float32)
    # torch.randn_like(mu) -> explicit standard-normal noise fed to the kernel.
    eps = jax.random.normal(k_eps, (B, D_LATENT), jnp.float32)
    params = init_params(k_p, D_IN, D_LATENT, D_HIDDEN, D_OUT)

    # Pack/pad parameters ONCE, outside the forward path.
    packed = prepare_params(params)
    fwd = jax.jit(functools.partial(simple_vae_decoder, packed=packed))

    y_pred, mu, logvar = jax.block_until_ready(fwd(z, eps))

    # Sanity check against a pure-JAX f32 reference.
    y_ref, mu_ref, lv_ref = reference_forward(z, eps, params)
    # mu/logvar go through the f32 head matmul -> tight tolerance.
    assert jnp.allclose(mu, mu_ref, atol=1e-5, rtol=1e-5)
    assert jnp.allclose(logvar, lv_ref, atol=1e-5, rtol=1e-5)
    # The MLP path uses bf16 MXU operands (f32 accumulation) -> looser y check.
    y_err = jnp.max(jnp.abs(y_pred - y_ref)) / (jnp.max(jnp.abs(y_ref)) + 1e-6)
    assert y_err < 5e-2

    print("KERNEL_OK")
</pallas_src>

<mosaic_0001>
module attributes {stable_mosaic.version = 11 : i64} {
  func.func @_vae_decoder_kernel(%arg0: i32, %arg1: memref<8x32xf32, #tpu.memory_space<vmem>>, %arg2: memref<8x128xf32, #tpu.memory_space<vmem>>, %arg3: memref<32x256xf32, #tpu.memory_space<vmem>>, %arg4: memref<128x128xbf16, #tpu.memory_space<vmem>>, %arg5: memref<128x256xbf16, #tpu.memory_space<vmem>>, %arg6: memref<1x640xf32, #tpu.memory_space<vmem>>, %arg7: memref<8x384xf32, #tpu.memory_space<vmem>>) attributes {dimension_semantics = [#tpu.dimension_semantics<parallel>], iteration_bounds = array<i64: 1>, scalar_prefetch = 0 : i64, scratch_operands = 0 : i64, tpu.core_type = #tpu.core_type<tc>, window_params = [{transform_indices = @transform_0, window_bounds = array<i64: 8, 32>}, {transform_indices = @transform_1, window_bounds = array<i64: 8, 128>}, {pipeline_mode = #tpu.pipeline_mode<synchronous>, transform_indices = @transform_2, window_bounds = array<i64: 32, 256>}, {pipeline_mode = #tpu.pipeline_mode<synchronous>, transform_indices = @transform_3, window_bounds = array<i64: 128, 128>}, {pipeline_mode = #tpu.pipeline_mode<synchronous>, transform_indices = @transform_4, window_bounds = array<i64: 128, 256>}, {pipeline_mode = #tpu.pipeline_mode<synchronous>, transform_indices = @transform_5, window_bounds = array<i64: 1, 640>}, {transform_indices = @transform_6, window_bounds = array<i64: 8, 384>}]} {
    %c0 = arith.constant 0 : index
    %c0_0 = arith.constant 0 : index
    %0 = vector.load %arg1[%c0, %c0_0] : memref<8x32xf32, #tpu.memory_space<vmem>>, vector<8x32xf32>
    %c0_1 = arith.constant 0 : index
    %c0_2 = arith.constant 0 : index
    %1 = vector.load %arg3[%c0_1, %c0_2] : memref<32x256xf32, #tpu.memory_space<vmem>>, vector<32x256xf32>
    %cst = arith.constant dense<0.000000e+00> : vector<8x256xf32>
    %2 = tpu.matmul %0, %1, %cst {dimension_numbers = #tpu.dot_dimension_numbers<[1], [0], [0], [1], [0, 0, 1, 1], [], []>} : vector<8x32xf32>, vector<32x256xf32>, vector<8x256xf32> -> vector<8x256xf32>
    %c0_3 = arith.constant 0 : index
    %c0_4 = arith.constant 0 : index
    %3 = vector.load %arg6[%c0_3, %c0_4] : memref<1x640xf32, #tpu.memory_space<vmem>>, vector<1x256xf32>
    %4 = vector.broadcast %3 : vector<1x256xf32> to vector<8x256xf32>
    %5 = arith.addf %2, %4 : vector<8x256xf32>
    %6 = vector.extract_strided_slice %5 {offsets = [0, 0], sizes = [8, 128], strides = [1, 1]} : vector<8x256xf32> to vector<8x128xf32>
    %7 = vector.extract_strided_slice %5 {offsets = [0, 128], sizes = [8, 128], strides = [1, 1]} : vector<8x256xf32> to vector<8x128xf32>
    %cst_5 = arith.constant 5.000000e-01 : f32
    %8 = vector.broadcast %cst_5 : f32 to vector<8x128xf32>
    %9 = arith.mulf %8, %7 : vector<8x128xf32>
    %10 = math.exp %9 : vector<8x128xf32>
    %c0_6 = arith.constant 0 : index
    %c0_7 = arith.constant 0 : index
    %11 = vector.load %arg2[%c0_6, %c0_7] : memref<8x128xf32, #tpu.memory_space<vmem>>, vector<8x128xf32>
    %12 = arith.mulf %10, %11 : vector<8x128xf32>
    %13 = arith.addf %6, %12 : vector<8x128xf32>
    %c0_8 = arith.constant 0 : index
    %c256 = arith.constant 256 : index
    %14 = vector.load %arg6[%c0_8, %c256] : memref<1x640xf32, #tpu.memory_space<vmem>>, vector<1x128xf32>
    %c0_9 = arith.constant 0 : index
    %c384 = arith.constant 384 : index
    %15 = vector.load %arg6[%c0_9, %c384] : memref<1x640xf32, #tpu.memory_space<vmem>>, vector<1x128xf32>
    %c0_10 = arith.constant 0 : index
    %c512 = arith.constant 512 : index
    %16 = vector.load %arg6[%c0_10, %c512] : memref<1x640xf32, #tpu.memory_space<vmem>>, vector<1x128xf32>
    %17 = arith.truncf %13 : vector<8x128xf32> to vector<8x128xbf16>
    %c0_11 = arith.constant 0 : index
    %c0_12 = arith.constant 0 : index
    %18 = vector.load %arg4[%c0_11, %c0_12] : memref<128x128xbf16, #tpu.memory_space<vmem>>, vector<128x128xbf16>
    %cst_13 = arith.constant dense<0.000000e+00> : vector<8x128xf32>
    %19 = tpu.matmul %17, %18, %cst_13 {dimension_numbers = #tpu.dot_dimension_numbers<[1], [0], [0], [1], [0, 0, 1, 1], [], []>} : vector<8x128xbf16>, vector<128x128xbf16>, vector<8x128xf32> -> vector<8x128xf32>
    %20 = vector.broadcast %14 : vector<1x128xf32> to vector<8x128xf32>
    %21 = arith.addf %19, %20 : vector<8x128xf32>
    %cst_14 = arith.constant 0.000000e+00 : f32
    %22 = vector.broadcast %cst_14 : f32 to vector<8x128xf32>
    %23 = arith.maximumf %21, %22 : vector<8x128xf32>
    %24 = arith.truncf %23 : vector<8x128xf32> to vector<8x128xbf16>
    %c0_15 = arith.constant 0 : index
    %c0_16 = arith.constant 0 : index
    %25 = vector.load %arg5[%c0_15, %c0_16] : memref<128x256xbf16, #tpu.memory_space<vmem>>, vector<128x128xbf16>
    %cst_17 = arith.constant dense<0.000000e+00> : vector<8x128xf32>
    %26 = tpu.matmul %24, %25, %cst_17 {dimension_numbers = #tpu.dot_dimension_numbers<[1], [0], [0], [1], [0, 0, 1, 1], [], []>} : vector<8x128xbf16>, vector<128x128xbf16>, vector<8x128xf32> -> vector<8x128xf32>
    %27 = vector.broadcast %15 : vector<1x128xf32> to vector<8x128xf32>
    %28 = arith.addf %26, %27 : vector<8x128xf32>
    %cst_18 = arith.constant 0.000000e+00 : f32
    %29 = vector.broadcast %cst_18 : f32 to vector<8x128xf32>
    %30 = arith.maximumf %28, %29 : vector<8x128xf32>
    %31 = arith.truncf %30 : vector<8x128xf32> to vector<8x128xbf16>
    %c0_19 = arith.constant 0 : index
    %c128 = arith.constant 128 : index
    %32 = vector.load %arg5[%c0_19, %c128] : memref<128x256xbf16, #tpu.memory_space<vmem>>, vector<128x128xbf16>
    %cst_20 = arith.constant dense<0.000000e+00> : vector<8x128xf32>
    %33 = tpu.matmul %31, %32, %cst_20 {dimension_numbers = #tpu.dot_dimension_numbers<[1], [0], [0], [1], [0, 0, 1, 1], [], []>} : vector<8x128xbf16>, vector<128x128xbf16>, vector<8x128xf32> -> vector<8x128xf32>
    %34 = vector.broadcast %16 : vector<1x128xf32> to vector<8x128xf32>
    %35 = arith.addf %33, %34 : vector<8x128xf32>
    %c0_21 = arith.constant 0 : index
    %c0_22 = arith.constant 0 : index
    %36 = vector.load %arg7[%c0_21, %c0_22] : memref<8x384xf32, #tpu.memory_space<vmem>>, vector<8x128xf32>
    tpu.vector_store %arg7[%c0_21, %c0_22], %35 {strides = array<i32>} : memref<8x384xf32, #tpu.memory_space<vmem>>, vector<8x128xf32>,
    %c0_23 = arith.constant 0 : index
    %c128_24 = arith.constant 128 : index
    %37 = vector.load %arg7[%c0_23, %c128_24] : memref<8x384xf32, #tpu.memory_space<vmem>>, vector<8x128xf32>
    tpu.vector_store %arg7[%c0_23, %c128_24], %6 {strides = array<i32>} : memref<8x384xf32, #tpu.memory_space<vmem>>, vector<8x128xf32>,
    %c0_25 = arith.constant 0 : index
    %c256_26 = arith.constant 256 : index
    %38 = vector.load %arg7[%c0_25, %c256_26] : memref<8x384xf32, #tpu.memory_space<vmem>>, vector<8x128xf32>
    tpu.vector_store %arg7[%c0_25, %c256_26], %7 {strides = array<i32>} : memref<8x384xf32, #tpu.memory_space<vmem>>, vector<8x128xf32>,
    return
  }
  func.func @transform_0(%arg0: i32) -> (i32, i32) {
    %c0_i32 = arith.constant 0 : i32
    %c0_i32_0 = arith.constant 0 : i32
    return %arg0, %c0_i32 : i32, i32
  }
  func.func @transform_1(%arg0: i32) -> (i32, i32) {
    %c0_i32 = arith.constant 0 : i32
    %c0_i32_0 = arith.constant 0 : i32
    return %arg0, %c0_i32 : i32, i32
  }
  func.func @transform_2(%arg0: i32) -> (i32, i32) {
    %c0_i32 = arith.constant 0 : i32
    %c0_i32_0 = arith.constant 0 : i32
    %c0_i32_1 = arith.constant 0 : i32
    return %c0_i32, %c0_i32_0 : i32, i32
  }
  func.func @transform_3(%arg0: i32) -> (i32, i32) {
    %c0_i32 = arith.constant 0 : i32
    %c0_i32_0 = arith.constant 0 : i32
    %c0_i32_1 = arith.constant 0 : i32
    return %c0_i32, %c0_i32_0 : i32, i32
  }
  func.func @transform_4(%arg0: i32) -> (i32, i32) {
    %c0_i32 = arith.constant 0 : i32
    %c0_i32_0 = arith.constant 0 : i32
    %c0_i32_1 = arith.constant 0 : i32
    return %c0_i32, %c0_i32_0 : i32, i32
  }
  func.func @transform_5(%arg0: i32) -> (i32, i32) {
    %c0_i32 = arith.constant 0 : i32
    %c0_i32_0 = arith.constant 0 : i32
    %c0_i32_1 = arith.constant 0 : i32
    return %c0_i32, %c0_i32_0 : i32, i32
  }
  func.func @transform_6(%arg0: i32) -> (i32, i32) {
    %c0_i32 = arith.constant 0 : i32
    %c0_i32_0 = arith.constant 0 : i32
    return %arg0, %c0_i32 : i32, i32
  }
}

</mosaic_0001>

<bundles_post_ra>
// kernel: simple_vae_decoder.1
= control target key start
LH: loop header
LB: loop body
LE: loop exit
PB: predicated region body
PF: predicated region fallthrough
CT: control target
= control target key end

     0   :  { %v622_v3 = vmov 0.0   ;;  %vm45_vm0 = vcmask 261120   ;;  %vm623_vm1 = vmmov 0   ;;  %v35_v28 = vlaneseq  ;;  %s813_s2 = inlined_call_operand.vmem [shape: f32[32,256], index: 2, kind: input, shape index: {}]   ;;  %s814_s3 = inlined_call_operand.vmem [shape: bf16[128,128], index: 3, kind: input, shape index: {}]   ;;  %s815_s0 = inlined_call_operand.vmem [shape: f32[8,32], index: 0, kind: input, shape index: {}]   ;;  %s816_s4 = inlined_call_operand.vmem [shape: bf16[128,256], index: 4, kind: input, shape index: {}]   ;;  %s817_s5 = inlined_call_operand.vmem [shape: f32[1,640], index: 5, kind: input, shape index: {}]   ;;  %s818_s6 = inlined_call_operand.vmem [shape: f32[8,384], index: 6, kind: output, shape index: {}]   ;;  %s819_s1 = inlined_call_operand.vmem [shape: f32[8,128], index: 1, kind: input, shape index: {}]  }
   0x1   :  { %v26_v0 = vld [vmem:[%s813_s2 + $0x8] sm:$0xff]  ;;  %v28_v1 = vld [vmem:[%s813_s2 + $0x18] sm:$0xff]  ;;  %v25_v2 = vld [vmem:[%s813_s2] sm:$0xff]  ;;  %113 = vmatprep.mubr.f32.mxu0 %v622_v3  ;;  %526 = vmatprep.subr.bf16.mxu1 %v622_v3 }
   0x2   :  { %v586_v4 = vpack.c.bf16 %v28_v1, %v26_v0  ;;  %v27_v5 = vld [vmem:[%s813_s2 + $0x10] sm:$0xff]  ;;  %v30_v6 = vld [vmem:[%s813_s2 + $0x28] sm:$0xff]  ;;  %v32_v7 = vld [vmem:[%s813_s2 + $0x38] sm:$0xff]  ;;  %542 = vmatprep.mubr.msk.bf16.mxu1 %vm623_vm1, %v622_v3  ;;  %v36_v29 = vshrl.u32 %v35_v28, 7 }
   0x3   :  { %v588_v8 = vpack.c.bf16 %v27_v5, %v25_v2  ;;  %v590_v9 = vpack.c.bf16 %v32_v7, %v30_v6  ;;  %v29_v10 = vld [vmem:[%s813_s2 + $0x20] sm:$0xff]  ;;  %v31_v11 = vld [vmem:[%s813_s2 + $0x30] sm:$0xff]  ;;  %v597_v14 = vld [vmem:[%s814_s3 + $0x8] sm:$0xff]  }
   0x4   :  { %587 = vmatprep.subr.bf16.mxu0 %v586_v4  ;;  %v596_v12 = vld [vmem:[%s814_s3] sm:$0xff]   ;;  %v592_v13 = vpack.c.bf16 %v31_v11, %v29_v10  ;;  %v598_v16 = vld [vmem:[%s814_s3 + $0x10] sm:$0xff]   ;;  %v599_v17 = vld [vmem:[%s814_s3 + $0x18] sm:$0xff]   ;;  %v37_v30 = vsub.s32 0, %v36_v29  ;;  %v41_v32 = vsub.s32 1, %v36_v29 }
   0x5   :  { %589 = vmatpush1.bf16.msra.mxu0 %v588_v8  ;;  %527 = vmatpush3.bf16.msra.mxu1 %v596_v12  ;;  %v24_v15 = vld [vmem:[%s815_s0] sm:$0xff]  ;;  %v601_v19 = vld [vmem:[%s814_s3 + $0x28] sm:$0xff]   ;;  %v602_v20 = vld [vmem:[%s814_s3 + $0x30] sm:$0xff]  }
   0x6   :  { %591 = vmatprep.subr.bf16.mxu0 %v590_v9  ;;  %528 = vmatprep.subr.bf16.mxu1 %v622_v3  ;;  %v600_v18 = vld [vmem:[%s814_s3 + $0x20] sm:$0xff]   ;;  %v603_v21 = vld [vmem:[%s814_s3 + $0x38] sm:$0xff]  }
   0x7   :  { %v604_v22 = vld [vmem:[%s816_s4] ss:$8 sps:$4 sm:$0xff]   ;;  %v605_v23 = vld [vmem:[%s816_s4 + $0x10] ss:$8 sps:$4 sm:$0xff]   ;;  %v612_v48 = vld [vmem:[%s816_s4 + $0x4] ss:$8 sps:$4 sm:$0xff]  }
   0x8   :  { %v606_v24 = vld [vmem:[%s816_s4 + $0x20] ss:$8 sps:$4 sm:$0xff]   ;;  %v607_v25 = vld [vmem:[%s816_s4 + $0x30] ss:$8 sps:$4 sm:$0xff]   ;;  %v613_v49 = vld [vmem:[%s816_s4 + $0x14] ss:$8 sps:$4 sm:$0xff]  }
   0x9   :  { %593 = vmatpush1.bf16.msra.mxu0 %v592_v13  ;;  %529 = vmatpush3.bf16.msra.mxu1 %v597_v14  ;;  %v608_v26 = vld [vmem:[%s816_s4 + $0x40] ss:$8 sps:$4 sm:$0xff]   ;;  %v609_v27 = vld [vmem:[%s816_s4 + $0x50] ss:$8 sps:$4 sm:$0xff]   ;;  %v614_v50 = vld [vmem:[%s816_s4 + $0x24] ss:$8 sps:$4 sm:$0xff]  }
   0xa   :  { %546 = vmatprep.subr.bf16.mxu0 %v622_v3  ;;  %530 = vmatprep.subr.bf16.mxu1 %v622_v3  ;;  %v33_v31 = vld [vmem:[%s817_s5] sm:$0x3]  ;;  %v611_v47 = vld [vmem:[%s816_s4 + $0x70] ss:$8 sps:$4 sm:$0xff]   ;;  %v615_v51 = vld [vmem:[%s816_s4 + $0x34] ss:$8 sps:$4 sm:$0xff]  }
   0xb   :  { %v38_v33 = vrot.slane %v33_v31, %v37_v30  ;;  %v42_v34 = vrot.slane %v33_v31, %v41_v32  ;;  %v123_v41 = vld [vmem:[%s819_s1] sm:$0xff]  ;;  %v617_v53 = vld [vmem:[%s816_s4 + $0x54] ss:$8 sps:$4 sm:$0xff]  }
   0xc   :  { %471 = vmatmul.mubr.msk.f32.vlgmr.msra.gmra.mrb[0].mxu0 %vm45_vm0, %v24_v15  ;;  %v610_v46 = vld [vmem:[%s816_s4 + $0x60] ss:$8 sps:$4 sm:$0xff]   ;;  %v616_v52 = vld [vmem:[%s816_s4 + $0x44] ss:$8 sps:$4 sm:$0xff]   ;;  %v619_v63 = vld [vmem:[%s816_s4 + $0x74] ss:$8 sps:$4 sm:$0xff]  }
   0xd   :  { %531 = vmatpush3.bf16.msra.mxu1 %v598_v16  ;;  %562 = vmatprep.mubr.msk.bf16.mxu0 %vm623_vm1, %v622_v3  ;;  %v472_v54 = vld [vmem:[%s817_s5 + $0x2] ss:$0 sm:$0xff]  ;;  %v618_v62 = vld [vmem:[%s816_s4 + $0x64] ss:$8 sps:$4 sm:$0xff]   ;;  %v481_v0 = vld [vmem:[%s817_s5 + $0x3] ss:$0 sm:$0xff] }
   0xe   :  { %532 = vmatprep.subr.bf16.mxu1 %v622_v3  ;;  %547 = vmatpush3.bf16.msra.mxu0 %v604_v22 }
   0xf   :  { %548 = vmatprep.subr.bf16.mxu0 %v622_v3 }
  0x11   :  { %533 = vmatpush3.bf16.msra.mxu1 %v599_v17 }
  0x12   :  { %534 = vmatprep.subr.bf16.mxu1 %v622_v3  ;;  %549 = vmatpush3.bf16.msra.mxu0 %v605_v23 }
  0x13   :  { %550 = vmatprep.subr.bf16.mxu0 %v622_v3 }
  0x15   :  { %535 = vmatpush3.bf16.msra.mxu1 %v600_v18 }
  0x16   :  { %536 = vmatprep.subr.bf16.mxu1 %v622_v3  ;;  %551 = vmatpush3.bf16.msra.mxu0 %v606_v24 }
  0x17   :  { %552 = vmatprep.subr.bf16.mxu0 %v622_v3 }
  0x19   :  { %537 = vmatpush3.bf16.msra.mxu1 %v601_v19 }
  0x1a   :  { %538 = vmatprep.subr.bf16.mxu1 %v622_v3  ;;  %553 = vmatpush3.bf16.msra.mxu0 %v607_v25 }
  0x1b   :  { %554 = vmatprep.subr.bf16.mxu0 %v622_v3 }
  0x1d   :  { %539 = vmatpush3.bf16.msra.mxu1 %v602_v20 }
  0x1e   :  { %540 = vmatprep.subr.bf16.mxu1 %v622_v3  ;;  %555 = vmatpush3.bf16.msra.mxu0 %v608_v26 }
  0x1f   :  { %556 = vmatprep.subr.bf16.mxu0 %v622_v3 }
  0x21   :  { %541 = vmatpush3.bf16.msra.mxu1 %v603_v21 }
  0x22   :  { %566 = vmatprep.subr.bf16.mxu1 %v622_v3  ;;  %557 = vmatpush3.bf16.msra.mxu0 %v609_v27 }
  0x23   :  { %558 = vmatprep.subr.bf16.mxu0 %v622_v3 }
  0x26   :  { %559 = vmatpush3.bf16.msra.mxu0 %v610_v46 }
  0x27   :  { %560 = vmatprep.subr.bf16.mxu0 %v622_v3 }
  0x2a   :  { %561 = vmatpush3.bf16.msra.mxu0 %v611_v47 }
  0xdf   :  { %v115_v35 = vpop.f32.mrb[0].mxu0 }
  0xe0   :  { %v116_v36 = vadd.f32 %v115_v35, %v38_v33  ;;  %v117_v37 = vpop.f32.mrb[1].mxu0 }
  0xe1   :  { %v118_v38 = vadd.f32 %v117_v37, %v42_v34 }
  0xe2   :  { %465 = vst [vmem:[%s818_s6 + $0x8] sm:$0xff] %v116_v36 }
  0xe3   :  { %v120_v39 = vmul.f32 0.5, %v118_v38  ;;  %466 = vst [vmem:[%s818_s6 + $0x10] sm:$0xff] %v118_v38 }
  0xe5   :  { %v121_v40 = vmul.f32 1.442695, %v120_v39 }
  0xe7   :  { %620 = vpow2.f32 %v121_v40 }
  0xf1   :  { %v621_v42 = vpop.eup %620 }
  0xf2   :  { %v124_v43 = vmul.f32 %v621_v42, %v123_v41 }
  0xf4   :  { %v125_v44 = vadd.f32 %v124_v43, %v116_v36 }
  0xf6   :  { %v129_v45 = vpack.c.bf16 %v125_v44, %v125_v44 }
  0xf8   :  { %543 = vmatmul.mubr.bf16.vlgmr.msra.gmra.mrb[0].mxu1 %v129_v45 }
  0xf9   :  { %582 = vmatprep.mubr.msk.bf16.mxu1 %vm623_vm1, %v622_v3  ;;  %567 = vmatpush3.bf16.msra.mxu1 %v612_v48 }
  0xfa   :  { %568 = vmatprep.subr.bf16.mxu1 %v622_v3 }
  0xfd   :  { %569 = vmatpush3.bf16.msra.mxu1 %v613_v49 }
  0xfe   :  { %570 = vmatprep.subr.bf16.mxu1 %v622_v3 }
 0x101   :  { %571 = vmatpush3.bf16.msra.mxu1 %v614_v50 }
 0x102   :  { %572 = vmatprep.subr.bf16.mxu1 %v622_v3 }
 0x105   :  { %573 = vmatpush3.bf16.msra.mxu1 %v615_v51 }
 0x106   :  { %574 = vmatprep.subr.bf16.mxu1 %v622_v3 }
 0x109   :  { %575 = vmatpush3.bf16.msra.mxu1 %v616_v52 }
 0x10a   :  { %576 = vmatprep.subr.bf16.mxu1 %v622_v3 }
 0x10d   :  { %577 = vmatpush3.bf16.msra.mxu1 %v617_v53 }
 0x10e   :  { %578 = vmatprep.subr.bf16.mxu1 %v622_v3 }
 0x111   :  { %579 = vmatpush3.bf16.msra.mxu1 %v618_v62 }
 0x112   :  { %580 = vmatprep.subr.bf16.mxu1 %v622_v3  ;;  %v490_v3 = vld [vmem:[%s817_s5 + $0x4] ss:$0 sm:$0xff] }
 0x115   :  { %581 = vmatpush3.bf16.msra.mxu1 %v619_v63 }
 0x1cb   :  { %v234_v55 = vpop.f32.mrb[0].mxu1 }
 0x1cc   :  { %v235_v56 = vadd.f32 %v472_v54, %v234_v55  ;;  %v544_v57 = vpop.f32.mrb[1].mxu1 }
 0x1cd   :  { %v237_v58 = vpop.f32.mrb[2].mxu1 }
 0x1ce   :  { %v240_v59 = vmax.f32 %v235_v56, 0.0  ;;  %v545_v60 = vpop.f32.mrb[3].mxu1 }
 0x1d0   :  { %v241_v61 = vpack.c.bf16 %v240_v59, %v240_v59 }
 0x1d2   :  { %563 = vmatmul.mubr.bf16.vlgmr.msra.gmra.mrb[4].mxu0 %v241_v61 }
 0x2a5   :  { %v346_v1 = vpop.f32.mrb[4].mxu0 }
 0x2a6   :  { %v347_v2 = vadd.f32 %v481_v0, %v346_v1  ;;  %v564_v4 = vpop.f32.mrb[5].mxu0 }
 0x2a7   :  { %v349_v5 = vpop.f32.mrb[6].mxu0 }
 0x2a8   :  { %v352_v6 = vmax.f32 %v347_v2, 0.0  ;;  %v565_v7 = vpop.f32.mrb[7].mxu0 }
 0x2aa   :  { %v353_v8 = vpack.c.bf16 %v352_v6, %v352_v6 }
 0x2ac   :  { %583 = vmatmul.mubr.bf16.vlgmr.msra.gmra.mrb[4].mxu1 %v353_v8 }
 0x37f   :  { %v458_v9 = vpop.f32.mrb[4].mxu1 }
 0x380   :  { %v459_v10 = vadd.f32 %v490_v3, %v458_v9  ;;  %v584_v11 = vpop.f32.mrb[5].mxu1 }
 0x381   :  { %v461_v12 = vpop.f32.mrb[6].mxu1 }
 0x382   :  { %464 = vst [vmem:[%s818_s6] sm:$0xff] %v459_v10  ;;  %v585_v13 = vpop.f32.mrb[7].mxu1 }

</bundles_post_ra>
